<compile_context>
chip_gen: v7x
topology: tpu7x:2x2x1
jax: 0.10.0
libtpu: 0.0.40
codegen_flags: <defaults>
</compile_context>

<pallas_src>
import functools

import jax
import jax.numpy as jnp
from jax.experimental import pallas as pl
from jax.experimental.pallas import tpu as pltpu


# ----------------------------------------------------------------------------
# Activations (act_type codes match the PyTorch module).
# ----------------------------------------------------------------------------
def _get_act(act_type):
    if act_type == 1:
        return jax.nn.relu
    if act_type == 2:
        return jnp.tanh
    if act_type == 3:
        return jax.nn.sigmoid
    if act_type == 4:
        return jax.nn.elu
    if act_type == 5:
        return jax.nn.silu
    if act_type == 6:                      # ELU2: elu(x)**2
        return lambda x: jax.nn.elu(x) ** 2
    if act_type == 7:                      # SiLU2: silu(x)**2
        return lambda x: jax.nn.silu(x) ** 2
    if act_type == 8:                      # ELU3: exp(x)-1, x^2 where x>=0
        return lambda x: jnp.where(x >= 0, x * x, jnp.exp(x) - 1.0)
    raise ValueError(f"unsupported act_type {act_type}")


# ----------------------------------------------------------------------------
# One GRU layer: sequential scan over time, hidden state carried in VMEM.
#   gate order (PyTorch): 0 = reset (r), 1 = update (z), 2 = new (n)
# ----------------------------------------------------------------------------
def _gru_layer_kernel(x_ref, wih_ref, whh_ref, bih_ref, bhh_ref,
                      hseq_ref, h_scr):
    t = pl.program_id(0)

    @pl.when(t == 0)
    def _():
        h_scr[...] = jnp.zeros_like(h_scr)

    x_t = x_ref[0]            # (B, F)   current timestep block
    h_prev = h_scr[...]       # (B, H)   carried hidden state

    def gates(i):
        gi = jnp.dot(x_t, wih_ref[i],
                     preferred_element_type=jnp.float32) + bih_ref[i]
        gh = jnp.dot(h_prev, whh_ref[i],
                     preferred_element_type=jnp.float32) + bhh_ref[i]
        return gi, gh

    ir, hr = gates(0)
    iz, hz = gates(1)
    in_, hn = gates(2)

    r = jax.nn.sigmoid(ir + hr)
    z = jax.nn.sigmoid(iz + hz)
    n = jnp.tanh(in_ + r * hn)
    h_new = (1.0 - z) * n + z * h_prev

    h_scr[...] = h_new
    hseq_ref[0] = h_new.astype(hseq_ref.dtype)


def _gru_layer(seq, w_ih, w_hh, b_ih, b_hh):
    """seq: (T, B, F) time-major -> full hidden-state sequence (T, B, H)."""
    T, B, F = seq.shape
    H = w_hh.shape[-1]
    return pl.pallas_call(
        _gru_layer_kernel,
        out_shape=jax.ShapeDtypeStruct((T, B, H), jnp.float32),
        grid=(T,),
        in_specs=[
            pl.BlockSpec((1, B, F), lambda t: (t, 0, 0)),    # x_t (pipelined)
            pl.BlockSpec((3, F, H), lambda t: (0, 0, 0)),    # W_ih (resident)
            pl.BlockSpec((3, H, H), lambda t: (0, 0, 0)),    # W_hh (resident)
            pl.BlockSpec((3, 1, H), lambda t: (0, 0, 0)),    # b_ih (resident)
            pl.BlockSpec((3, 1, H), lambda t: (0, 0, 0)),    # b_hh (resident)
        ],
        out_specs=pl.BlockSpec((1, B, H), lambda t: (t, 0, 0)),
        scratch_shapes=[pltpu.VMEM((B, H), jnp.float32)],
        compiler_params=pltpu.CompilerParams(
            dimension_semantics=("arbitrary",)),   # carried state -> sequential
    )(seq, w_ih, w_hh, b_ih, b_hh)


# ----------------------------------------------------------------------------
# Head: h_new = act(Wx(x_last) + Wh(h_old)); z = Wz-MLP(h); dzdt = z_new-z_old.
# One fused grid=() kernel (all operands tiny; GRU scan dominates).
# ----------------------------------------------------------------------------
def _make_head_kernel(num_mlp_layers, act):
    def kernel(*refs):
        x_last = refs[0][...]
        h_old = refs[1][...]
        wx_w = refs[2][...]
        wx_b = refs[3][...]
        wh_w = refs[4][...]
        wh_b = refs[5][...]
        mlp_refs = refs[6:6 + 2 * num_mlp_layers]
        z_new_ref = refs[6 + 2 * num_mlp_layers]
        dzdt_ref = refs[7 + 2 * num_mlp_layers]

        h_new = act(
            jnp.dot(x_last, wx_w, preferred_element_type=jnp.float32) + wx_b
            + jnp.dot(h_old, wh_w, preferred_element_type=jnp.float32) + wh_b)

        def run_mlp(h):
            for li in range(num_mlp_layers):
                w = mlp_refs[2 * li][...]
                b = mlp_refs[2 * li + 1][...]
                h = jnp.dot(h, w, preferred_element_type=jnp.float32) + b
                if li < num_mlp_layers - 1:     # final fc has no activation
                    h = act(h)
            return h

        z_old = run_mlp(h_old)
        z_new = run_mlp(h_new)
        z_new_ref[...] = z_new.astype(z_new_ref.dtype)
        dzdt_ref[...] = (z_new - z_old).astype(dzdt_ref.dtype)

    return kernel


def _head(x_last, h_old, wx, wh, wz_layers, act_type):
    B = x_last.shape[0]
    n_out = wz_layers[-1][0].shape[-1]
    flat = []
    for w, b in wz_layers:
        flat.extend([w, b])
    num_mlp = len(wz_layers)
    kernel = _make_head_kernel(num_mlp, _get_act(act_type))
    n_in = 6 + 2 * num_mlp
    return pl.pallas_call(
        kernel,
        out_shape=(jax.ShapeDtypeStruct((B, n_out), jnp.float32),
                   jax.ShapeDtypeStruct((B, n_out), jnp.float32)),
        in_specs=[pl.BlockSpec(memory_space=pltpu.VMEM)] * n_in,
        out_specs=(pl.BlockSpec(memory_space=pltpu.VMEM),
                   pl.BlockSpec(memory_space=pltpu.VMEM)),
    )(x_last, h_old, wx[0], wx[1], wh[0], wh[1], *flat)


# ----------------------------------------------------------------------------
# Full forward (JAX/Pallas equivalent of GRU.forward).
# ----------------------------------------------------------------------------
def gru_forward(params, x, *, n_inputs, final_input_size, n_outputs, act_type):
    x = x.astype(jnp.float32)
    # (B, T, F) -> time-major (T-1, B, n_inputs) for the scan kernels.
    seq = jnp.transpose(x[:, :-1, :n_inputs], (1, 0, 2))
    for (w_ih, w_hh, b_ih, b_hh) in params["gru"]:
        seq = _gru_layer(seq, w_ih, w_hh, b_ih, b_hh)
    h_old = seq[-1]                                   # hn[-1]: (B, H)

    x_last = x[:, -1, :final_input_size]              # (B, final_input_size)
    z_new, dzdt = _head(x_last, h_old, params["wx"], params["wh"],
                        params["wz"], act_type)
    # Match torch `.view(-1, n_outputs)`.
    return z_new.reshape(-1, n_outputs), dzdt.reshape(-1, n_outputs)


# ----------------------------------------------------------------------------
# Parameter construction (no learned weights required; deterministic init).
# ----------------------------------------------------------------------------
def init_params(key, *, n_inputs, n_hidden, n_layers, final_input_size,
                final_unit):
    def dense(k, fan_in, shape):
        bound = 1.0 / jnp.sqrt(jnp.float32(fan_in))
        return jax.random.uniform(k, shape, jnp.float32, -bound, bound)

    keys = iter(jax.random.split(key, 8 * n_layers + 4 * len(final_unit) + 8))
    params = {"gru": [], "wz": []}
    for l in range(n_layers):
        f_in = n_inputs if l == 0 else n_hidden
        params["gru"].append((
            dense(next(keys), n_hidden, (3, f_in, n_hidden)),     # W_ih (r,z,n)
            dense(next(keys), n_hidden, (3, n_hidden, n_hidden)),  # W_hh
            dense(next(keys), n_hidden, (3, 1, n_hidden)),         # b_ih
            dense(next(keys), n_hidden, (3, 1, n_hidden)),         # b_hh
        ))
    params["wx"] = (dense(next(keys), final_input_size,
                          (final_input_size, n_hidden)),
                    dense(next(keys), final_input_size, (1, n_hidden)))
    params["wh"] = (dense(next(keys), n_hidden, (n_hidden, n_hidden)),
                    dense(next(keys), n_hidden, (1, n_hidden)))
    for i in range(len(final_unit) - 1):
        params["wz"].append((
            dense(next(keys), final_unit[i], (final_unit[i], final_unit[i + 1])),
            dense(next(keys), final_unit[i], (1, final_unit[i + 1])),
        ))
    return params


# ----------------------------------------------------------------------------
# Pure-JAX reference (same math, no Pallas) for the correctness check.
# ----------------------------------------------------------------------------
def reference_forward(params, x, *, n_inputs, final_input_size, n_outputs,
                      act_type):
    act = _get_act(act_type)
    hp = jax.lax.Precision.HIGHEST
    x = x.astype(jnp.float32)
    B = x.shape[0]
    inp = x[:, :-1, :n_inputs]                        # (B, T-1, n_inputs)
    for (w_ih, w_hh, b_ih, b_hh) in params["gru"]:
        H = w_hh.shape[-1]
        h = jnp.zeros((B, H), jnp.float32)
        outs = []
        for t in range(inp.shape[1]):
            x_t = inp[:, t]
            r = jax.nn.sigmoid(jnp.dot(x_t, w_ih[0], precision=hp) + b_ih[0]
                               + jnp.dot(h, w_hh[0], precision=hp) + b_hh[0])
            z = jax.nn.sigmoid(jnp.dot(x_t, w_ih[1], precision=hp) + b_ih[1]
                               + jnp.dot(h, w_hh[1], precision=hp) + b_hh[1])
            n = jnp.tanh(jnp.dot(x_t, w_ih[2], precision=hp) + b_ih[2]
                         + r * (jnp.dot(h, w_hh[2], precision=hp) + b_hh[2]))
            h = (1.0 - z) * n + z * h
            outs.append(h)
        inp = jnp.stack(outs, axis=1)
    h_old = h

    def mlp(hv):
        for li, (w, b) in enumerate(params["wz"]):
            hv = jnp.dot(hv, w, precision=hp) + b
            if li < len(params["wz"]) - 1:
                hv = act(hv)
        return hv

    z_old = mlp(h_old)
    x_last = x[:, -1, :final_input_size]
    h_new = act(jnp.dot(x_last, params["wx"][0], precision=hp) + params["wx"][1]
                + jnp.dot(h_old, params["wh"][0], precision=hp) + params["wh"][1])
    z_new = mlp(h_new)
    return (z_new.reshape(-1, n_outputs),
            (z_new - z_old).reshape(-1, n_outputs))


if __name__ == "__main__":
    # Module config: gru_unit=[8, 32, 4], gru_layers=2, final_input_size=10,
    # final_unit=[32, 24, 4], act_type=2 (Tanh). x: (batch=4, seq=8, feat=12).
    B, T, F = 4, 8, 12
    n_inputs, n_hidden, n_outputs = 8, 32, 4
    n_layers = 2
    final_input_size = 10
    final_unit = [32, 24, 4]
    act_type = 2
    # TODO(synk): `gpu` flag / `.cuda()` and the unused `train_scaler` ctor arg
    # have no kernel-level equivalent (they do not affect the forward math).

    key = jax.random.PRNGKey(0)
    kx, kp = jax.random.split(key)
    x = jax.random.normal(kx, (B, T, F), jnp.float32)
    params = init_params(kp, n_inputs=n_inputs, n_hidden=n_hidden,
                         n_layers=n_layers, final_input_size=final_input_size,
                         final_unit=final_unit)

    fwd = jax.jit(functools.partial(
        gru_forward, n_inputs=n_inputs, final_input_size=final_input_size,
        n_outputs=n_outputs, act_type=act_type))

    z_new, dzdt = fwd(params, x)
    jax.block_until_ready((z_new, dzdt))

    z_ref, d_ref = reference_forward(
        params, x, n_inputs=n_inputs, final_input_size=final_input_size,
        n_outputs=n_outputs, act_type=act_type)

    assert z_new.shape == (B, n_outputs) and dzdt.shape == (B, n_outputs)
    assert jnp.allclose(z_new, z_ref, rtol=1e-3, atol=1e-3), (z_new, z_ref)
    assert jnp.allclose(dzdt, d_ref, rtol=1e-3, atol=1e-3), (dzdt, d_ref)

    print("KERNEL_OK")
</pallas_src>

<mosaic_0001>
module attributes {stable_mosaic.version = 11 : i64} {
  func.func @_gru_layer_kernel(%arg0: i32, %arg1: memref<1x4x32xf32, #tpu.memory_space<vmem>>, %arg2: memref<3x32x32xf32, #tpu.memory_space<vmem>>, %arg3: memref<3x32x32xf32, #tpu.memory_space<vmem>>, %arg4: memref<3x1x32xf32, #tpu.memory_space<vmem>>, %arg5: memref<3x1x32xf32, #tpu.memory_space<vmem>>, %arg6: memref<1x4x32xf32, #tpu.memory_space<vmem>>, %arg7: memref<4x32xf32, #tpu.memory_space<vmem>>) attributes {dimension_semantics = [#tpu.dimension_semantics<arbitrary>], iteration_bounds = array<i64: 7>, scalar_prefetch = 0 : i64, scratch_operands = 1 : i64, tpu.core_type = #tpu.core_type<tc>, window_params = [{transform_indices = @transform_0, window_bounds = array<i64: 1, 4, 32>}, {pipeline_mode = #tpu.pipeline_mode<synchronous>, transform_indices = @transform_1, window_bounds = array<i64: 3, 32, 32>}, {pipeline_mode = #tpu.pipeline_mode<synchronous>, transform_indices = @transform_2, window_bounds = array<i64: 3, 32, 32>}, {pipeline_mode = #tpu.pipeline_mode<synchronous>, transform_indices = @transform_3, window_bounds = array<i64: 3, 1, 32>}, {pipeline_mode = #tpu.pipeline_mode<synchronous>, transform_indices = @transform_4, window_bounds = array<i64: 3, 1, 32>}, {transform_indices = @transform_5, window_bounds = array<i64: 1, 4, 32>}]} {
    %c0_i32 = arith.constant 0 : i32
    %0 = arith.cmpi eq, %arg0, %c0_i32 : i32
    %1 = arith.extui %0 : i1 to i32
    %c0_i32_0 = arith.constant 0 : i32
    %2 = arith.cmpi ne, %1, %c0_i32_0 : i32
    scf.if %2 {
      %cst_52 = arith.constant 0.000000e+00 : f32
      %72 = vector.broadcast %cst_52 : f32 to vector<4x32xf32>
      %c0_53 = arith.constant 0 : index
      %c0_54 = arith.constant 0 : index
      %73 = vector.load %arg7[%c0_53, %c0_54] : memref<4x32xf32, #tpu.memory_space<vmem>>, vector<4x32xf32>
      tpu.vector_store %arg7[%c0_53, %c0_54], %72 {strides = array<i32>} : memref<4x32xf32, #tpu.memory_space<vmem>>, vector<4x32xf32>,
    } else {
    }
    %c0 = arith.constant 0 : index
    %c0_1 = arith.constant 0 : index
    %c0_2 = arith.constant 0 : index
    %3 = vector.load %arg1[%c0, %c0_1, %c0_2] : memref<1x4x32xf32, #tpu.memory_space<vmem>>, vector<1x4x32xf32>
    %4 = vector.shape_cast %3 : vector<1x4x32xf32> to vector<4x32xf32>
    %c0_3 = arith.constant 0 : index
    %c0_4 = arith.constant 0 : index
    %5 = vector.load %arg7[%c0_3, %c0_4] : memref<4x32xf32, #tpu.memory_space<vmem>>, vector<4x32xf32>
    %c0_5 = arith.constant 0 : index
    %c0_6 = arith.constant 0 : index
    %c0_7 = arith.constant 0 : index
    %6 = vector.load %arg2[%c0_5, %c0_6, %c0_7] : memref<3x32x32xf32, #tpu.memory_space<vmem>>, vector<1x32x32xf32>
    %7 = vector.shape_cast %6 : vector<1x32x32xf32> to vector<32x32xf32>
    %cst = arith.constant dense<0.000000e+00> : vector<4x32xf32>
    %8 = tpu.matmul %4, %7, %cst {dimension_numbers = #tpu.dot_dimension_numbers<[1], [0], [0], [1], [0, 0, 1, 1], [], []>} : vector<4x32xf32>, vector<32x32xf32>, vector<4x32xf32> -> vector<4x32xf32>
    %c0_8 = arith.constant 0 : index
    %c0_9 = arith.constant 0 : index
    %c0_10 = arith.constant 0 : index
    %9 = vector.load %arg4[%c0_8, %c0_9, %c0_10] : memref<3x1x32xf32, #tpu.memory_space<vmem>>, vector<1x1x32xf32>
    %10 = vector.shape_cast %9 : vector<1x1x32xf32> to vector<1x32xf32>
    %11 = vector.broadcast %10 : vector<1x32xf32> to vector<4x32xf32>
    %12 = arith.addf %8, %11 : vector<4x32xf32>
    %c0_11 = arith.constant 0 : index
    %c0_12 = arith.constant 0 : index
    %c0_13 = arith.constant 0 : index
    %13 = vector.load %arg3[%c0_11, %c0_12, %c0_13] : memref<3x32x32xf32, #tpu.memory_space<vmem>>, vector<1x32x32xf32>
    %14 = vector.shape_cast %13 : vector<1x32x32xf32> to vector<32x32xf32>
    %cst_14 = arith.constant dense<0.000000e+00> : vector<4x32xf32>
    %15 = tpu.matmul %5, %14, %cst_14 {dimension_numbers = #tpu.dot_dimension_numbers<[1], [0], [0], [1], [0, 0, 1, 1], [], []>} : vector<4x32xf32>, vector<32x32xf32>, vector<4x32xf32> -> vector<4x32xf32>
    %c0_15 = arith.constant 0 : index
    %c0_16 = arith.constant 0 : index
    %c0_17 = arith.constant 0 : index
    %16 = vector.load %arg5[%c0_15, %c0_16, %c0_17] : memref<3x1x32xf32, #tpu.memory_space<vmem>>, vector<1x1x32xf32>
    %17 = vector.shape_cast %16 : vector<1x1x32xf32> to vector<1x32xf32>
    %18 = vector.broadcast %17 : vector<1x32xf32> to vector<4x32xf32>
    %19 = arith.addf %15, %18 : vector<4x32xf32>
    %c1 = arith.constant 1 : index
    %c0_18 = arith.constant 0 : index
    %c0_19 = arith.constant 0 : index
    %20 = vector.load %arg2[%c1, %c0_18, %c0_19] : memref<3x32x32xf32, #tpu.memory_space<vmem>>, vector<1x32x32xf32>
    %21 = vector.shape_cast %20 : vector<1x32x32xf32> to vector<32x32xf32>
    %cst_20 = arith.constant dense<0.000000e+00> : vector<4x32xf32>
    %22 = tpu.matmul %4, %21, %cst_20 {dimension_numbers = #tpu.dot_dimension_numbers<[1], [0], [0], [1], [0, 0, 1, 1], [], []>} : vector<4x32xf32>, vector<32x32xf32>, vector<4x32xf32> -> vector<4x32xf32>
    %c1_21 = arith.constant 1 : index
    %c0_22 = arith.constant 0 : index
    %c0_23 = arith.constant 0 : index
    %23 = vector.load %arg4[%c1_21, %c0_22, %c0_23] : memref<3x1x32xf32, #tpu.memory_space<vmem>>, vector<1x1x32xf32>
    %24 = vector.shape_cast %23 : vector<1x1x32xf32> to vector<1x32xf32>
    %25 = vector.broadcast %24 : vector<1x32xf32> to vector<4x32xf32>
    %26 = arith.addf %22, %25 : vector<4x32xf32>
    %c1_24 = arith.constant 1 : index
    %c0_25 = arith.constant 0 : index
    %c0_26 = arith.constant 0 : index
    %27 = vector.load %arg3[%c1_24, %c0_25, %c0_26] : memref<3x32x32xf32, #tpu.memory_space<vmem>>, vector<1x32x32xf32>
    %28 = vector.shape_cast %27 : vector<1x32x32xf32> to vector<32x32xf32>
    %cst_27 = arith.constant dense<0.000000e+00> : vector<4x32xf32>
    %29 = tpu.matmul %5, %28, %cst_27 {dimension_numbers = #tpu.dot_dimension_numbers<[1], [0], [0], [1], [0, 0, 1, 1], [], []>} : vector<4x32xf32>, vector<32x32xf32>, vector<4x32xf32> -> vector<4x32xf32>
    %c1_28 = arith.constant 1 : index
    %c0_29 = arith.constant 0 : index
    %c0_30 = arith.constant 0 : index
    %30 = vector.load %arg5[%c1_28, %c0_29, %c0_30] : memref<3x1x32xf32, #tpu.memory_space<vmem>>, vector<1x1x32xf32>
    %31 = vector.shape_cast %30 : vector<1x1x32xf32> to vector<1x32xf32>
    %32 = vector.broadcast %31 : vector<1x32xf32> to vector<4x32xf32>
    %33 = arith.addf %29, %32 : vector<4x32xf32>
    %c2 = arith.constant 2 : index
    %c0_31 = arith.constant 0 : index
    %c0_32 = arith.constant 0 : index
    %34 = vector.load %arg2[%c2, %c0_31, %c0_32] : memref<3x32x32xf32, #tpu.memory_space<vmem>>, vector<1x32x32xf32>
    %35 = vector.shape_cast %34 : vector<1x32x32xf32> to vector<32x32xf32>
    %cst_33 = arith.constant dense<0.000000e+00> : vector<4x32xf32>
    %36 = tpu.matmul %4, %35, %cst_33 {dimension_numbers = #tpu.dot_dimension_numbers<[1], [0], [0], [1], [0, 0, 1, 1], [], []>} : vector<4x32xf32>, vector<32x32xf32>, vector<4x32xf32> -> vector<4x32xf32>
    %c2_34 = arith.constant 2 : index
    %c0_35 = arith.constant 0 : index
    %c0_36 = arith.constant 0 : index
    %37 = vector.load %arg4[%c2_34, %c0_35, %c0_36] : memref<3x1x32xf32, #tpu.memory_space<vmem>>, vector<1x1x32xf32>
    %38 = vector.shape_cast %37 : vector<1x1x32xf32> to vector<1x32xf32>
    %39 = vector.broadcast %38 : vector<1x32xf32> to vector<4x32xf32>
    %40 = arith.addf %36, %39 : vector<4x32xf32>
    %c2_37 = arith.constant 2 : index
    %c0_38 = arith.constant 0 : index
    %c0_39 = arith.constant 0 : index
    %41 = vector.load %arg3[%c2_37, %c0_38, %c0_39] : memref<3x32x32xf32, #tpu.memory_space<vmem>>, vector<1x32x32xf32>
    %42 = vector.shape_cast %41 : vector<1x32x32xf32> to vector<32x32xf32>
    %cst_40 = arith.constant dense<0.000000e+00> : vector<4x32xf32>
    %43 = tpu.matmul %5, %42, %cst_40 {dimension_numbers = #tpu.dot_dimension_numbers<[1], [0], [0], [1], [0, 0, 1, 1], [], []>} : vector<4x32xf32>, vector<32x32xf32>, vector<4x32xf32> -> vector<4x32xf32>
    %c2_41 = arith.constant 2 : index
    %c0_42 = arith.constant 0 : index
    %c0_43 = arith.constant 0 : index
    %44 = vector.load %arg5[%c2_41, %c0_42, %c0_43] : memref<3x1x32xf32, #tpu.memory_space<vmem>>, vector<1x1x32xf32>
    %45 = vector.shape_cast %44 : vector<1x1x32xf32> to vector<1x32xf32>
    %46 = vector.broadcast %45 : vector<1x32xf32> to vector<4x32xf32>
    %47 = arith.addf %43, %46 : vector<4x32xf32>
    %48 = arith.addf %12, %19 : vector<4x32xf32>
    %49 = arith.negf %48 : vector<4x32xf32>
    %50 = math.exp %49 : vector<4x32xf32>
    %cst_44 = arith.constant 1.000000e+00 : f32
    %51 = vector.broadcast %cst_44 : f32 to vector<4x32xf32>
    %52 = arith.addf %51, %50 : vector<4x32xf32>
    %53 = arith.divf %51, %52 : vector<4x32xf32>
    %54 = arith.addf %26, %33 : vector<4x32xf32>
    %55 = arith.negf %54 : vector<4x32xf32>
    %56 = math.exp %55 : vector<4x32xf32>
    %cst_45 = arith.constant 1.000000e+00 : f32
    %57 = vector.broadcast %cst_45 : f32 to vector<4x32xf32>
    %58 = arith.addf %57, %56 : vector<4x32xf32>
    %59 = arith.divf %57, %58 : vector<4x32xf32>
    %60 = arith.mulf %53, %47 : vector<4x32xf32>
    %61 = arith.addf %40, %60 : vector<4x32xf32>
    %62 = math.tanh %61 : vector<4x32xf32>
    %cst_46 = arith.constant 1.000000e+00 : f32
    %63 = vector.broadcast %cst_46 : f32 to vector<4x32xf32>
    %64 = arith.subf %63, %59 : vector<4x32xf32>
    %65 = arith.mulf %64, %62 : vector<4x32xf32>
    %66 = arith.mulf %59, %5 : vector<4x32xf32>
    %67 = arith.addf %65, %66 : vector<4x32xf32>
    %c0_47 = arith.constant 0 : index
    %c0_48 = arith.constant 0 : index
    %68 = vector.load %arg7[%c0_47, %c0_48] : memref<4x32xf32, #tpu.memory_space<vmem>>, vector<4x32xf32>
    tpu.vector_store %arg7[%c0_47, %c0_48], %67 {strides = array<i32>} : memref<4x32xf32, #tpu.memory_space<vmem>>, vector<4x32xf32>,
    %c0_49 = arith.constant 0 : index
    %c0_50 = arith.constant 0 : index
    %c0_51 = arith.constant 0 : index
    %69 = vector.load %arg6[%c0_49, %c0_50, %c0_51] : memref<1x4x32xf32, #tpu.memory_space<vmem>>, vector<1x4x32xf32>
    %70 = vector.shape_cast %69 : vector<1x4x32xf32> to vector<4x32xf32>
    %71 = vector.shape_cast %67 : vector<4x32xf32> to vector<1x4x32xf32>
    tpu.vector_store %arg6[%c0_49, %c0_50, %c0_51], %71 {strides = array<i32>} : memref<1x4x32xf32, #tpu.memory_space<vmem>>, vector<1x4x32xf32>,
    return
  }
  func.func @transform_0(%arg0: i32) -> (i32, i32, i32) {
    %c0_i32 = arith.constant 0 : i32
    %c0_i32_0 = arith.constant 0 : i32
    %c0_i32_1 = arith.constant 0 : i32
    return %arg0, %c0_i32, %c0_i32_0 : i32, i32, i32
  }
  func.func @transform_1(%arg0: i32) -> (i32, i32, i32) {
    %c0_i32 = arith.constant 0 : i32
    %c0_i32_0 = arith.constant 0 : i32
    %c0_i32_1 = arith.constant 0 : i32
    %c0_i32_2 = arith.constant 0 : i32
    return %c0_i32, %c0_i32_0, %c0_i32_1 : i32, i32, i32
  }
  func.func @transform_2(%arg0: i32) -> (i32, i32, i32) {
    %c0_i32 = arith.constant 0 : i32
    %c0_i32_0 = arith.constant 0 : i32
    %c0_i32_1 = arith.constant 0 : i32
    %c0_i32_2 = arith.constant 0 : i32
    return %c0_i32, %c0_i32_0, %c0_i32_1 : i32, i32, i32
  }
  func.func @transform_3(%arg0: i32) -> (i32, i32, i32) {
    %c0_i32 = arith.constant 0 : i32
    %c0_i32_0 = arith.constant 0 : i32
    %c0_i32_1 = arith.constant 0 : i32
    %c0_i32_2 = arith.constant 0 : i32
    return %c0_i32, %c0_i32_0, %c0_i32_1 : i32, i32, i32
  }
  func.func @transform_4(%arg0: i32) -> (i32, i32, i32) {
    %c0_i32 = arith.constant 0 : i32
    %c0_i32_0 = arith.constant 0 : i32
    %c0_i32_1 = arith.constant 0 : i32
    %c0_i32_2 = arith.constant 0 : i32
    return %c0_i32, %c0_i32_0, %c0_i32_1 : i32, i32, i32
  }
  func.func @transform_5(%arg0: i32) -> (i32, i32, i32) {
    %c0_i32 = arith.constant 0 : i32
    %c0_i32_0 = arith.constant 0 : i32
    %c0_i32_1 = arith.constant 0 : i32
    return %arg0, %c0_i32, %c0_i32_0 : i32, i32, i32
  }
}

module attributes {stable_mosaic.version = 11 : i64} {
  func.func @_gru_layer_kernel(%arg0: i32, %arg1: memref<1x4x8xf32, #tpu.memory_space<vmem>>, %arg2: memref<3x8x32xf32, #tpu.memory_space<vmem>>, %arg3: memref<3x32x32xf32, #tpu.memory_space<vmem>>, %arg4: memref<3x1x32xf32, #tpu.memory_space<vmem>>, %arg5: memref<3x1x32xf32, #tpu.memory_space<vmem>>, %arg6: memref<1x4x32xf32, #tpu.memory_space<vmem>>, %arg7: memref<4x32xf32, #tpu.memory_space<vmem>>) attributes {dimension_semantics = [#tpu.dimension_semantics<arbitrary>], iteration_bounds = array<i64: 7>, scalar_prefetch = 0 : i64, scratch_operands = 1 : i64, tpu.core_type = #tpu.core_type<tc>, window_params = [{transform_indices = @transform_0, window_bounds = array<i64: 1, 4, 8>}, {pipeline_mode = #tpu.pipeline_mode<synchronous>, transform_indices = @transform_1, window_bounds = array<i64: 3, 8, 32>}, {pipeline_mode = #tpu.pipeline_mode<synchronous>, transform_indices = @transform_2, window_bounds = array<i64: 3, 32, 32>}, {pipeline_mode = #tpu.pipeline_mode<synchronous>, transform_indices = @transform_3, window_bounds = array<i64: 3, 1, 32>}, {pipeline_mode = #tpu.pipeline_mode<synchronous>, transform_indices = @transform_4, window_bounds = array<i64: 3, 1, 32>}, {transform_indices = @transform_5, window_bounds = array<i64: 1, 4, 32>}]} {
    %c0_i32 = arith.constant 0 : i32
    %0 = arith.cmpi eq, %arg0, %c0_i32 : i32
    %1 = arith.extui %0 : i1 to i32
    %c0_i32_0 = arith.constant 0 : i32
    %2 = arith.cmpi ne, %1, %c0_i32_0 : i32
    scf.if %2 {
      %cst_52 = arith.constant 0.000000e+00 : f32
      %72 = vector.broadcast %cst_52 : f32 to vector<4x32xf32>
      %c0_53 = arith.constant 0 : index
      %c0_54 = arith.constant 0 : index
      %73 = vector.load %arg7[%c0_53, %c0_54] : memref<4x32xf32, #tpu.memory_space<vmem>>, vector<4x32xf32>
      tpu.vector_store %arg7[%c0_53, %c0_54], %72 {strides = array<i32>} : memref<4x32xf32, #tpu.memory_space<vmem>>, vector<4x32xf32>,
    } else {
    }
    %c0 = arith.constant 0 : index
    %c0_1 = arith.constant 0 : index
    %c0_2 = arith.constant 0 : index
    %3 = vector.load %arg1[%c0, %c0_1, %c0_2] : memref<1x4x8xf32, #tpu.memory_space<vmem>>, vector<1x4x8xf32>
    %4 = vector.shape_cast %3 : vector<1x4x8xf32> to vector<4x8xf32>
    %c0_3 = arith.constant 0 : index
    %c0_4 = arith.constant 0 : index
    %5 = vector.load %arg7[%c0_3, %c0_4] : memref<4x32xf32, #tpu.memory_space<vmem>>, vector<4x32xf32>
    %c0_5 = arith.constant 0 : index
    %c0_6 = arith.constant 0 : index
    %c0_7 = arith.constant 0 : index
    %6 = vector.load %arg2[%c0_5, %c0_6, %c0_7] : memref<3x8x32xf32, #tpu.memory_space<vmem>>, vector<1x8x32xf32>
    %7 = vector.shape_cast %6 : vector<1x8x32xf32> to vector<8x32xf32>
    %cst = arith.constant dense<0.000000e+00> : vector<4x32xf32>
    %8 = tpu.matmul %4, %7, %cst {dimension_numbers = #tpu.dot_dimension_numbers<[1], [0], [0], [1], [0, 0, 1, 1], [], []>} : vector<4x8xf32>, vector<8x32xf32>, vector<4x32xf32> -> vector<4x32xf32>
    %c0_8 = arith.constant 0 : index
    %c0_9 = arith.constant 0 : index
    %c0_10 = arith.constant 0 : index
    %9 = vector.load %arg4[%c0_8, %c0_9, %c0_10] : memref<3x1x32xf32, #tpu.memory_space<vmem>>, vector<1x1x32xf32>
    %10 = vector.shape_cast %9 : vector<1x1x32xf32> to vector<1x32xf32>
    %11 = vector.broadcast %10 : vector<1x32xf32> to vector<4x32xf32>
    %12 = arith.addf %8, %11 : vector<4x32xf32>
    %c0_11 = arith.constant 0 : index
    %c0_12 = arith.constant 0 : index
    %c0_13 = arith.constant 0 : index
    %13 = vector.load %arg3[%c0_11, %c0_12, %c0_13] : memref<3x32x32xf32, #tpu.memory_space<vmem>>, vector<1x32x32xf32>
    %14 = vector.shape_cast %13 : vector<1x32x32xf32> to vector<32x32xf32>
    %cst_14 = arith.constant dense<0.000000e+00> : vector<4x32xf32>
    %15 = tpu.matmul %5, %14, %cst_14 {dimension_numbers = #tpu.dot_dimension_numbers<[1], [0], [0], [1], [0, 0, 1, 1], [], []>} : vector<4x32xf32>, vector<32x32xf32>, vector<4x32xf32> -> vector<4x32xf32>
    %c0_15 = arith.constant 0 : index
    %c0_16 = arith.constant 0 : index
    %c0_17 = arith.constant 0 : index
    %16 = vector.load %arg5[%c0_15, %c0_16, %c0_17] : memref<3x1x32xf32, #tpu.memory_space<vmem>>, vector<1x1x32xf32>
    %17 = vector.shape_cast %16 : vector<1x1x32xf32> to vector<1x32xf32>
    %18 = vector.broadcast %17 : vector<1x32xf32> to vector<4x32xf32>
    %19 = arith.addf %15, %18 : vector<4x32xf32>
    %c1 = arith.constant 1 : index
    %c0_18 = arith.constant 0 : index
    %c0_19 = arith.constant 0 : index
    %20 = vector.load %arg2[%c1, %c0_18, %c0_19] : memref<3x8x32xf32, #tpu.memory_space<vmem>>, vector<1x8x32xf32>
    %21 = vector.shape_cast %20 : vector<1x8x32xf32> to vector<8x32xf32>
    %cst_20 = arith.constant dense<0.000000e+00> : vector<4x32xf32>
    %22 = tpu.matmul %4, %21, %cst_20 {dimension_numbers = #tpu.dot_dimension_numbers<[1], [0], [0], [1], [0, 0, 1, 1], [], []>} : vector<4x8xf32>, vector<8x32xf32>, vector<4x32xf32> -> vector<4x32xf32>
    %c1_21 = arith.constant 1 : index
    %c0_22 = arith.constant 0 : index
    %c0_23 = arith.constant 0 : index
    %23 = vector.load %arg4[%c1_21, %c0_22, %c0_23] : memref<3x1x32xf32, #tpu.memory_space<vmem>>, vector<1x1x32xf32>
    %24 = vector.shape_cast %23 : vector<1x1x32xf32> to vector<1x32xf32>
    %25 = vector.broadcast %24 : vector<1x32xf32> to vector<4x32xf32>
    %26 = arith.addf %22, %25 : vector<4x32xf32>
    %c1_24 = arith.constant 1 : index
    %c0_25 = arith.constant 0 : index
    %c0_26 = arith.constant 0 : index
    %27 = vector.load %arg3[%c1_24, %c0_25, %c0_26] : memref<3x32x32xf32, #tpu.memory_space<vmem>>, vector<1x32x32xf32>
    %28 = vector.shape_cast %27 : vector<1x32x32xf32> to vector<32x32xf32>
    %cst_27 = arith.constant dense<0.000000e+00> : vector<4x32xf32>
    %29 = tpu.matmul %5, %28, %cst_27 {dimension_numbers = #tpu.dot_dimension_numbers<[1], [0], [0], [1], [0, 0, 1, 1], [], []>} : vector<4x32xf32>, vector<32x32xf32>, vector<4x32xf32> -> vector<4x32xf32>
    %c1_28 = arith.constant 1 : index
    %c0_29 = arith.constant 0 : index
    %c0_30 = arith.constant 0 : index
    %30 = vector.load %arg5[%c1_28, %c0_29, %c0_30] : memref<3x1x32xf32, #tpu.memory_space<vmem>>, vector<1x1x32xf32>
    %31 = vector.shape_cast %30 : vector<1x1x32xf32> to vector<1x32xf32>
    %32 = vector.broadcast %31 : vector<1x32xf32> to vector<4x32xf32>
    %33 = arith.addf %29, %32 : vector<4x32xf32>
    %c2 = arith.constant 2 : index
    %c0_31 = arith.constant 0 : index
    %c0_32 = arith.constant 0 : index
    %34 = vector.load %arg2[%c2, %c0_31, %c0_32] : memref<3x8x32xf32, #tpu.memory_space<vmem>>, vector<1x8x32xf32>
    %35 = vector.shape_cast %34 : vector<1x8x32xf32> to vector<8x32xf32>
    %cst_33 = arith.constant dense<0.000000e+00> : vector<4x32xf32>
    %36 = tpu.matmul %4, %35, %cst_33 {dimension_numbers = #tpu.dot_dimension_numbers<[1], [0], [0], [1], [0, 0, 1, 1], [], []>} : vector<4x8xf32>, vector<8x32xf32>, vector<4x32xf32> -> vector<4x32xf32>
    %c2_34 = arith.constant 2 : index
    %c0_35 = arith.constant 0 : index
    %c0_36 = arith.constant 0 : index
    %37 = vector.load %arg4[%c2_34, %c0_35, %c0_36] : memref<3x1x32xf32, #tpu.memory_space<vmem>>, vector<1x1x32xf32>
    %38 = vector.shape_cast %37 : vector<1x1x32xf32> to vector<1x32xf32>
    %39 = vector.broadcast %38 : vector<1x32xf32> to vector<4x32xf32>
    %40 = arith.addf %36, %39 : vector<4x32xf32>
    %c2_37 = arith.constant 2 : index
    %c0_38 = arith.constant 0 : index
    %c0_39 = arith.constant 0 : index
    %41 = vector.load %arg3[%c2_37, %c0_38, %c0_39] : memref<3x32x32xf32, #tpu.memory_space<vmem>>, vector<1x32x32xf32>
    %42 = vector.shape_cast %41 : vector<1x32x32xf32> to vector<32x32xf32>
    %cst_40 = arith.constant dense<0.000000e+00> : vector<4x32xf32>
    %43 = tpu.matmul %5, %42, %cst_40 {dimension_numbers = #tpu.dot_dimension_numbers<[1], [0], [0], [1], [0, 0, 1, 1], [], []>} : vector<4x32xf32>, vector<32x32xf32>, vector<4x32xf32> -> vector<4x32xf32>
    %c2_41 = arith.constant 2 : index
    %c0_42 = arith.constant 0 : index
    %c0_43 = arith.constant 0 : index
    %44 = vector.load %arg5[%c2_41, %c0_42, %c0_43] : memref<3x1x32xf32, #tpu.memory_space<vmem>>, vector<1x1x32xf32>
    %45 = vector.shape_cast %44 : vector<1x1x32xf32> to vector<1x32xf32>
    %46 = vector.broadcast %45 : vector<1x32xf32> to vector<4x32xf32>
    %47 = arith.addf %43, %46 : vector<4x32xf32>
    %48 = arith.addf %12, %19 : vector<4x32xf32>
    %49 = arith.negf %48 : vector<4x32xf32>
    %50 = math.exp %49 : vector<4x32xf32>
    %cst_44 = arith.constant 1.000000e+00 : f32
    %51 = vector.broadcast %cst_44 : f32 to vector<4x32xf32>
    %52 = arith.addf %51, %50 : vector<4x32xf32>
    %53 = arith.divf %51, %52 : vector<4x32xf32>
    %54 = arith.addf %26, %33 : vector<4x32xf32>
    %55 = arith.negf %54 : vector<4x32xf32>
    %56 = math.exp %55 : vector<4x32xf32>
    %cst_45 = arith.constant 1.000000e+00 : f32
    %57 = vector.broadcast %cst_45 : f32 to vector<4x32xf32>
    %58 = arith.addf %57, %56 : vector<4x32xf32>
    %59 = arith.divf %57, %58 : vector<4x32xf32>
    %60 = arith.mulf %53, %47 : vector<4x32xf32>
    %61 = arith.addf %40, %60 : vector<4x32xf32>
    %62 = math.tanh %61 : vector<4x32xf32>
    %cst_46 = arith.constant 1.000000e+00 : f32
    %63 = vector.broadcast %cst_46 : f32 to vector<4x32xf32>
    %64 = arith.subf %63, %59 : vector<4x32xf32>
    %65 = arith.mulf %64, %62 : vector<4x32xf32>
    %66 = arith.mulf %59, %5 : vector<4x32xf32>
    %67 = arith.addf %65, %66 : vector<4x32xf32>
    %c0_47 = arith.constant 0 : index
    %c0_48 = arith.constant 0 : index
    %68 = vector.load %arg7[%c0_47, %c0_48] : memref<4x32xf32, #tpu.memory_space<vmem>>, vector<4x32xf32>
    tpu.vector_store %arg7[%c0_47, %c0_48], %67 {strides = array<i32>} : memref<4x32xf32, #tpu.memory_space<vmem>>, vector<4x32xf32>,
    %c0_49 = arith.constant 0 : index
    %c0_50 = arith.constant 0 : index
    %c0_51 = arith.constant 0 : index
    %69 = vector.load %arg6[%c0_49, %c0_50, %c0_51] : memref<1x4x32xf32, #tpu.memory_space<vmem>>, vector<1x4x32xf32>
    %70 = vector.shape_cast %69 : vector<1x4x32xf32> to vector<4x32xf32>
    %71 = vector.shape_cast %67 : vector<4x32xf32> to vector<1x4x32xf32>
    tpu.vector_store %arg6[%c0_49, %c0_50, %c0_51], %71 {strides = array<i32>} : memref<1x4x32xf32, #tpu.memory_space<vmem>>, vector<1x4x32xf32>,
    return
  }
  func.func @transform_0(%arg0: i32) -> (i32, i32, i32) {
    %c0_i32 = arith.constant 0 : i32
    %c0_i32_0 = arith.constant 0 : i32
    %c0_i32_1 = arith.constant 0 : i32
    return %arg0, %c0_i32, %c0_i32_0 : i32, i32, i32
  }
  func.func @transform_1(%arg0: i32) -> (i32, i32, i32) {
    %c0_i32 = arith.constant 0 : i32
    %c0_i32_0 = arith.constant 0 : i32
    %c0_i32_1 = arith.constant 0 : i32
    %c0_i32_2 = arith.constant 0 : i32
    return %c0_i32, %c0_i32_0, %c0_i32_1 : i32, i32, i32
  }
  func.func @transform_2(%arg0: i32) -> (i32, i32, i32) {
    %c0_i32 = arith.constant 0 : i32
    %c0_i32_0 = arith.constant 0 : i32
    %c0_i32_1 = arith.constant 0 : i32
    %c0_i32_2 = arith.constant 0 : i32
    return %c0_i32, %c0_i32_0, %c0_i32_1 : i32, i32, i32
  }
  func.func @transform_3(%arg0: i32) -> (i32, i32, i32) {
    %c0_i32 = arith.constant 0 : i32
    %c0_i32_0 = arith.constant 0 : i32
    %c0_i32_1 = arith.constant 0 : i32
    %c0_i32_2 = arith.constant 0 : i32
    return %c0_i32, %c0_i32_0, %c0_i32_1 : i32, i32, i32
  }
  func.func @transform_4(%arg0: i32) -> (i32, i32, i32) {
    %c0_i32 = arith.constant 0 : i32
    %c0_i32_0 = arith.constant 0 : i32
    %c0_i32_1 = arith.constant 0 : i32
    %c0_i32_2 = arith.constant 0 : i32
    return %c0_i32, %c0_i32_0, %c0_i32_1 : i32, i32, i32
  }
  func.func @transform_5(%arg0: i32) -> (i32, i32, i32) {
    %c0_i32 = arith.constant 0 : i32
    %c0_i32_0 = arith.constant 0 : i32
    %c0_i32_1 = arith.constant 0 : i32
    return %arg0, %c0_i32, %c0_i32_0 : i32, i32, i32
  }
}

module attributes {stable_mosaic.version = 11 : i64} {
  func.func @kernel(%arg0: memref<4x10xf32, #tpu.memory_space<vmem>>, %arg1: memref<4x32xf32, #tpu.memory_space<vmem>>, %arg2: memref<10x32xf32, #tpu.memory_space<vmem>>, %arg3: memref<1x32xf32, #tpu.memory_space<vmem>>, %arg4: memref<32x32xf32, #tpu.memory_space<vmem>>, %arg5: memref<1x32xf32, #tpu.memory_space<vmem>>, %arg6: memref<32x24xf32, #tpu.memory_space<vmem>>, %arg7: memref<1x24xf32, #tpu.memory_space<vmem>>, %arg8: memref<24x4xf32, #tpu.memory_space<vmem>>, %arg9: memref<1x4xf32, #tpu.memory_space<vmem>>, %arg10: memref<4x4xf32, #tpu.memory_space<vmem>>, %arg11: memref<4x4xf32, #tpu.memory_space<vmem>>) attributes {dimension_semantics = [], scalar_prefetch = 0 : i64, scratch_operands = 0 : i64, tpu.core_type = #tpu.core_type<tc>} {
    %c0 = arith.constant 0 : index
    %c0_0 = arith.constant 0 : index
    %0 = vector.load %arg0[%c0, %c0_0] : memref<4x10xf32, #tpu.memory_space<vmem>>, vector<4x10xf32>
    %c0_1 = arith.constant 0 : index
    %c0_2 = arith.constant 0 : index
    %1 = vector.load %arg1[%c0_1, %c0_2] : memref<4x32xf32, #tpu.memory_space<vmem>>, vector<4x32xf32>
    %c0_3 = arith.constant 0 : index
    %c0_4 = arith.constant 0 : index
    %2 = vector.load %arg2[%c0_3, %c0_4] : memref<10x32xf32, #tpu.memory_space<vmem>>, vector<10x32xf32>
    %c0_5 = arith.constant 0 : index
    %c0_6 = arith.constant 0 : index
    %3 = vector.load %arg3[%c0_5, %c0_6] : memref<1x32xf32, #tpu.memory_space<vmem>>, vector<1x32xf32>
    %c0_7 = arith.constant 0 : index
    %c0_8 = arith.constant 0 : index
    %4 = vector.load %arg4[%c0_7, %c0_8] : memref<32x32xf32, #tpu.memory_space<vmem>>, vector<32x32xf32>
    %c0_9 = arith.constant 0 : index
    %c0_10 = arith.constant 0 : index
    %5 = vector.load %arg5[%c0_9, %c0_10] : memref<1x32xf32, #tpu.memory_space<vmem>>, vector<1x32xf32>
    %cst = arith.constant dense<0.000000e+00> : vector<4x32xf32>
    %6 = tpu.matmul %0, %2, %cst {dimension_numbers = #tpu.dot_dimension_numbers<[1], [0], [0], [1], [0, 0, 1, 1], [], []>} : vector<4x10xf32>, vector<10x32xf32>, vector<4x32xf32> -> vector<4x32xf32>
    %7 = vector.broadcast %3 : vector<1x32xf32> to vector<4x32xf32>
    %8 = arith.addf %6, %7 : vector<4x32xf32>
    %cst_11 = arith.constant dense<0.000000e+00> : vector<4x32xf32>
    %9 = tpu.matmul %1, %4, %cst_11 {dimension_numbers = #tpu.dot_dimension_numbers<[1], [0], [0], [1], [0, 0, 1, 1], [], []>} : vector<4x32xf32>, vector<32x32xf32>, vector<4x32xf32> -> vector<4x32xf32>
    %10 = arith.addf %8, %9 : vector<4x32xf32>
    %11 = vector.broadcast %5 : vector<1x32xf32> to vector<4x32xf32>
    %12 = arith.addf %10, %11 : vector<4x32xf32>
    %13 = math.tanh %12 : vector<4x32xf32>
    %c0_12 = arith.constant 0 : index
    %c0_13 = arith.constant 0 : index
    %14 = vector.load %arg6[%c0_12, %c0_13] : memref<32x24xf32, #tpu.memory_space<vmem>>, vector<32x24xf32>
    %c0_14 = arith.constant 0 : index
    %c0_15 = arith.constant 0 : index
    %15 = vector.load %arg7[%c0_14, %c0_15] : memref<1x24xf32, #tpu.memory_space<vmem>>, vector<1x24xf32>
    %cst_16 = arith.constant dense<0.000000e+00> : vector<4x24xf32>
    %16 = tpu.matmul %1, %14, %cst_16 {dimension_numbers = #tpu.dot_dimension_numbers<[1], [0], [0], [1], [0, 0, 1, 1], [], []>} : vector<4x32xf32>, vector<32x24xf32>, vector<4x24xf32> -> vector<4x24xf32>
    %17 = vector.broadcast %15 : vector<1x24xf32> to vector<4x24xf32>
    %18 = arith.addf %16, %17 : vector<4x24xf32>
    %19 = math.tanh %18 : vector<4x24xf32>
    %c0_17 = arith.constant 0 : index
    %c0_18 = arith.constant 0 : index
    %20 = vector.load %arg8[%c0_17, %c0_18] : memref<24x4xf32, #tpu.memory_space<vmem>>, vector<24x4xf32>
    %c0_19 = arith.constant 0 : index
    %c0_20 = arith.constant 0 : index
    %21 = vector.load %arg9[%c0_19, %c0_20] : memref<1x4xf32, #tpu.memory_space<vmem>>, vector<1x4xf32>
    %cst_21 = arith.constant dense<0.000000e+00> : vector<4x4xf32>
    %22 = tpu.matmul %19, %20, %cst_21 {dimension_numbers = #tpu.dot_dimension_numbers<[1], [0], [0], [1], [0, 0, 1, 1], [], []>} : vector<4x24xf32>, vector<24x4xf32>, vector<4x4xf32> -> vector<4x4xf32>
    %23 = vector.broadcast %21 : vector<1x4xf32> to vector<4x4xf32>
    %24 = arith.addf %22, %23 : vector<4x4xf32>
    %c0_22 = arith.constant 0 : index
    %c0_23 = arith.constant 0 : index
    %25 = vector.load %arg6[%c0_22, %c0_23] : memref<32x24xf32, #tpu.memory_space<vmem>>, vector<32x24xf32>
    %c0_24 = arith.constant 0 : index
    %c0_25 = arith.constant 0 : index
    %26 = vector.load %arg7[%c0_24, %c0_25] : memref<1x24xf32, #tpu.memory_space<vmem>>, vector<1x24xf32>
    %cst_26 = arith.constant dense<0.000000e+00> : vector<4x24xf32>
    %27 = tpu.matmul %13, %25, %cst_26 {dimension_numbers = #tpu.dot_dimension_numbers<[1], [0], [0], [1], [0, 0, 1, 1], [], []>} : vector<4x32xf32>, vector<32x24xf32>, vector<4x24xf32> -> vector<4x24xf32>
    %28 = vector.broadcast %26 : vector<1x24xf32> to vector<4x24xf32>
    %29 = arith.addf %27, %28 : vector<4x24xf32>
    %30 = math.tanh %29 : vector<4x24xf32>
    %c0_27 = arith.constant 0 : index
    %c0_28 = arith.constant 0 : index
    %31 = vector.load %arg8[%c0_27, %c0_28] : memref<24x4xf32, #tpu.memory_space<vmem>>, vector<24x4xf32>
    %c0_29 = arith.constant 0 : index
    %c0_30 = arith.constant 0 : index
    %32 = vector.load %arg9[%c0_29, %c0_30] : memref<1x4xf32, #tpu.memory_space<vmem>>, vector<1x4xf32>
    %cst_31 = arith.constant dense<0.000000e+00> : vector<4x4xf32>
    %33 = tpu.matmul %30, %31, %cst_31 {dimension_numbers = #tpu.dot_dimension_numbers<[1], [0], [0], [1], [0, 0, 1, 1], [], []>} : vector<4x24xf32>, vector<24x4xf32>, vector<4x4xf32> -> vector<4x4xf32>
    %34 = vector.broadcast %32 : vector<1x4xf32> to vector<4x4xf32>
    %35 = arith.addf %33, %34 : vector<4x4xf32>
    %c0_32 = arith.constant 0 : index
    %c0_33 = arith.constant 0 : index
    %36 = vector.load %arg10[%c0_32, %c0_33] : memref<4x4xf32, #tpu.memory_space<vmem>>, vector<4x4xf32>
    tpu.vector_store %arg10[%c0_32, %c0_33], %35 {strides = array<i32>} : memref<4x4xf32, #tpu.memory_space<vmem>>, vector<4x4xf32>,
    %37 = arith.subf %35, %24 : vector<4x4xf32>
    %c0_34 = arith.constant 0 : index
    %c0_35 = arith.constant 0 : index
    %38 = vector.load %arg11[%c0_34, %c0_35] : memref<4x4xf32, #tpu.memory_space<vmem>>, vector<4x4xf32>
    tpu.vector_store %arg11[%c0_34, %c0_35], %37 {strides = array<i32>} : memref<4x4xf32, #tpu.memory_space<vmem>>, vector<4x4xf32>,
    return
  }
}

</mosaic_0001>

<bundles_post_ra>
// kernel: gru_forward.3
= control target key start
LH: loop header
LB: loop body
LE: loop exit
PB: predicated region body
PF: predicated region fallthrough
CT: control target
= control target key end

     0   :  { %10 = vsyncpa [#allocation4], 0  ;;  %s1299_s0 = inlined_call_operand.vmem [shape: f32[7,4,8], index: 0, kind: input, shape index: {}]   ;;  %s1300_s1 = inlined_call_operand.hbm [shape: f32[3,8,32], index: 1, kind: input, shape index: {}]   ;;  %s1301_s2 = inlined_call_operand.vmem [shape: f32[3,32,32], index: 2, kind: input, shape index: {}]   ;;  %s1302_s3 = inlined_call_operand.vmem [shape: f32[3,1,32], index: 3, kind: input, shape index: {}]   ;;  %s1303_s4 = inlined_call_operand.hbm [shape: f32[3,1,32], index: 4, kind: input, shape index: {}]   ;;  %s1304_s5 = inlined_call_operand.vmem [shape: f32[7,4,32], index: 5, kind: output, shape index: {}]  }
   0x1   :  { %11 = vsyncpa [#allocation6], 0  ;;  %s1142_s18 = smov 0  }
   0x2 LB: > { %s1102_s19 = smov [#allocation3]   ;;  %s1148_s21 = sadd.s32 4294967295, %s1100_s18   ;;  %s1100_s18 = sphi %s1142_s18, %s17_s18  }
   0x3   : > { %s170_s20 = sshll.u32 %s1102_s19, 4  ;;  %p852_p0 = scmp.ge.s32.totalorder %s1100_s18, 1  ;;  %s171_s20 = int_to_ptr.vmem [resolvable:$true] %s170_s20 }
   0x4   : > { %p158_p1 = scmp.lt.s32.totalorder %s1100_s18, 8  ;;  %p1305_p4 = scmp.eq.s32.totalorder %s1148_s21, 0 }
   0x5   : > { %s1103_s23 = smov [#allocation5]   ;;  %s1030_s28 = scalar_lea.hbm %s1300_s1, 384 }
   0x6   : > { %p1153_p3 = pnand %p852_p0, %p158_p1  ;;  %s189_s24 = sshll.u32 %s1103_s23, 4  ;;  %s1166_s24 = int_to_ptr.vmem [resolvable:$true] %s189_s24 }
   0x7   : > { %p1031_p7 = scmp.ne.s32.totalorder %s1300_s1, %s1030_s28  ;;  %p1037_p11 = scmp.lt.u32.totalorder %s1030_s28, %s1300_s1 }
   0x8   : > { %s1307_s22 = scalar_select %p1153_p3, 1, 0 }
   0x9   : > { %p991_p5 = pneg %p1153_p3 }
   0xb   : > { %p1162_p6 = pnand %p1305_p4, %p991_p5 }
   0xd   : > { %p1032_p8 = pneg %p1162_p6 }
   0xf   : > { %p1033_p9 = pnand %p1032_p8, %p1031_p7 }
  0x11   : > { %p1034_p10 = pneg %p1033_p9 }
  0x13   : > { %p1039_p12 = pnand %p1037_p11, %p1034_p10 }
  0x15   : > { %1042 = shalt.err (!%p1039_p12)
}
  0x16   : > { %s1043_s8 = scalar_lea.vmem %s171_s20, 384  ;;  %p1051_p5 = scmp.lt.s32.totalorder %s171_s20, %s171_s20 }
  0x17   : > { %p1044_p13 = scmp.ne.s32.totalorder %s171_s20, %s1043_s8  ;;  %p1052_p2 = scmp.lt.s32.totalorder %s1043_s8, %s1043_s8 }
  0x19   : > { %p1046_p0 = pnand %p1044_p13, %p1032_p8  ;;  %p1053_p4 = por %p1052_p2, %p1051_p5 }
  0x1b   : > { %p1047_p1 = pneg %p1046_p0 }
  0x1d   : > { %p1054_p3 = pnand %p1053_p4, %p1047_p1 }
  0x1f   : > { %1057 = shalt.err (!%p1054_p3)
}
  0x20   : > { %s1104_s9 = smov 128   ;;  %s1105_s10 = smov 8  }
  0x21   : > { %994 = dma.hbm_to_vmem [thread:$0]  (!%p1162_p6), %s1300_s1, 384, %s171_s20, [#allocation4], %s1104_s9, %s1104_s9, %s1105_s10  }
  0x22   : > { %s1058_s15 = scalar_lea.hbm %s1303_s4, 48 }
  0x23   : > { %p1059_p7 = scmp.ne.s32.totalorder %s1303_s4, %s1058_s15  ;;  %p1065_p4 = scmp.lt.u32.totalorder %s1058_s15, %s1303_s4 }
  0x25   : > { %p1061_p2 = pnand %p1059_p7, %p1032_p8 }
  0x27   : > { %p1062_p3 = pneg %p1061_p2 }
  0x29   : > { %p1067_p9 = pnand %p1065_p4, %p1062_p3 }
  0x2b   : > { %1070 = shalt.err (!%p1067_p9)
}
  0x2c   : > { %s1071_s20 = scalar_lea.vmem %s1166_s24, 48  ;;  %s1078_s26 = scalar_lea.vmem %s1166_s24, 64 }
  0x2d   : > { %p1072_p10 = scmp.ne.s32.totalorder %s1166_s24, %s1071_s20  ;;  %p1079_p13 = scmp.lt.s32.totalorder %s1166_s24, %s1166_s24 }
  0x2e   : > { %p1080_p0 = scmp.lt.s32.totalorder %s1078_s26, %s1071_s20 }
  0x2f   : > { %p1074_p11 = pnand %p1072_p10, %p1032_p8 }
  0x30   : > { %p1081_p1 = por %p1080_p0, %p1079_p13 }
  0x31   : > { %p1075_p12 = pneg %p1074_p11 }
  0x33   : > { %p1082_p5 = pnand %p1081_p1, %p1075_p12 }
  0x35   : > { %1085 = shalt.err (!%p1082_p5)
}
  0x36   : > { %s1106_s27 = smov 16   ;;  %s1107_s28 = smov 1  }
  0x37   : > { %997 = dma.hbm_to_vmem [thread:$0]  (!%p1162_p6), %s1303_s4, 48, %s1166_s24, [#allocation6], %s1106_s27, %s1106_s27, %s1107_s28  }
  0x38   : > { %p1309_p7 = scmp.ne.s32.totalorder %s1307_s22, 0 }
  0x39   : > { %p1310_p8 = scmp.eq.s32.totalorder (!%p1309_p7), %s1148_s21, 0 }
  0x3a   : > { %212 = sbr.rel (%p1309_p7) target bundleno = 351 (0x15f), region = 40 }
  0x41   : > { %1091 = dma.done.wait (%p1310_p8), [#allocation4], 384   ;;  %p1311_p2 = pmov %p1310_p8 }
  0x43   : > { %1093 = vsyncadd (%p1311_p2), [#allocation4], 4294966912  ;;  %p1312_p3 = pmov %p1311_p2 }
  0x44   : > { %p1313_p4 = pmov %p1311_p2 }
  0x45   : > { %1095 = dma.done.wait (%p1312_p3), [#allocation6], 48  }
  0x46   : > { %1097 = vsyncadd (%p1313_p4), [#allocation6], 4294967248  ;;  %p242_p9 = scmp.lt.s32.totalorder %s1148_s21, 6  ;;  %p1314_p6 = scmp.ne.s32.totalorder %s1148_s21, 0 }
  0x47   : > { %vm254_vm0 = vcmask (!%p1314_p6), 257024   ;;  %v1108_v0 = vmov (!%p1314_p6), 0.0  }
  0x48   : > { %s243_s25 = scalar_select %p242_p9, %s1148_s21, 6 }
  0x49   : > { %253 = sbr.rel (%p1314_p6) target bundleno = 80 (0x50), region = 52  ;;  %255 = vst.msk [vmem:[#allocation2] sm:$0xf] (!%p1314_p6), %vm254_vm0, %v1108_v0 }
  0x4a   : > { %s859_s24 = sshll.u32 %s243_s25, 2 }
  0x4b   : > { %s245_s7 = scalar_lea.vmem %s1299_s0, %s859_s24  ;;  %s1234_s10 = scalar_lea.vmem %s1304_s5, %s859_s24 }
  0x50 PF: > { %v258_v1 = vld [vmem:[#allocation3] sm:$0xff]  ;;  %v256_v2 = vld [vmem:[%s245_s7] sm:$0xf]  ;;  %vm266_vm1 = vcmask 64512   ;;  %v1109_v3 = vmov 0.0   ;;  %vm1110_vm2 = vmmov 0  }
  0x51   : > { %909 = vmatprep.subr.mxu0 %v1109_v3  ;;  %911 = vmatprep.mubr.msk.f32.mxu0 %vm1110_vm2, %v1109_v3  ;;  %v340_v4 = vld [vmem:[%s1301_s2] sm:$0xff]  ;;  %v341_v5 = vld [vmem:[%s1301_s2 + $0x8] sm:$0xff]  ;;  %v342_v8 = vld [vmem:[%s1301_s2 + $0x10] sm:$0xff]  ;;  %v1111_v11 = vmov 0.0|0.0   ;;  %vm351_vm3 = vcmask 261120   ;;  %vm772_vm4 = vcmask 257024  }
  0x52   : > { %v426_v6 = vld [vmem:[#allocation3 + $0x8] sm:$0xff]  ;;  %910 = vmatpush3.msra.mxu0 %v258_v1  ;;  %v958_v7 = vpack.c.bf16 %v341_v5, %v340_v4  ;;  %925 = vmatprep.subr.mxu1 %v1109_v3  ;;  %v343_v9 = vld [vmem:[%s1301_s2 + $0x18] sm:$0xff]  ;;  %v869_v10 = vld [vmem:[%s1301_s2 + $0x20] sm:$0xff] }
  0x53   : > { %912 = vmatmul.mubr.msk.f32.vlgmr.msra.gmra.mrb[0].mxu0 %vm266_vm1, %v256_v2  ;;  %957 = vmatprep.subr.bf16.mxu0 %v1111_v11  ;;  %v870_v12 = vld [vmem:[%s1301_s2 + $0x28] sm:$0xff]  ;;  %v961_v13 = vpack.c.bf16 %v343_v9, %v342_v8  ;;  %v871_v15 = vld [vmem:[%s1301_s2 + $0x30] sm:$0xff]  ;;  %v872_v16 = vld [vmem:[%s1301_s2 + $0x38] sm:$0xff] }
  0x54   : > { %959 = vmatpush3.bf16.msra.mxu0 %v958_v7  ;;  %926 = vmatpush3.msra.mxu1 %v426_v6  ;;  %v964_v14 = vpack.c.bf16 %v870_v12, %v869_v10  ;;  %v967_v17 = vpack.c.bf16 %v872_v16, %v871_v15  ;;  %v257_v18 = vld [vmem:[#allocation2] sm:$0xf]  ;;  %v879_v20 = vld [vmem:[%s1301_s2 + $0x48] sm:$0xff]  ;;  %v589_v21 = vld [vmem:[#allocation3 + $0x10] sm:$0xff] }
  0x55   : > { %960 = vmatprep.subr.bf16.mxu0 %v1111_v11  ;;  %927 = vmatprep.mubr.msk.f32.mxu1 %vm1110_vm2, %v1109_v3  ;;  %v878_v19 = vld [vmem:[%s1301_s2 + $0x40] sm:$0xff]  ;;  %v880_v23 = vld [vmem:[%s1301_s2 + $0x50] sm:$0xff]  ;;  %v881_v24 = vld [vmem:[%s1301_s2 + $0x58] sm:$0xff] }
  0x56   : > { %928 = vmatmul.mubr.msk.f32.vlgmr.msra.gmra.mrb[0].mxu1 %vm266_vm1, %v256_v2  ;;  %963 = vmatprep.subr.bf16.mxu1 %v1111_v11  ;;  %v970_v22 = vpack.c.bf16 %v879_v20, %v878_v19  ;;  %v973_v25 = vpack.c.bf16 %v881_v24, %v880_v23  ;;  %v862_v26 = vld [vmem:[%s1302_s3] ss:$0 sm:$0xff]  ;;  %v864_v27 = vld [vmem:[#allocation5] ss:$0 sm:$0xff]  ;;  %v867_v29 = vld [vmem:[%s1302_s3 + $0x1] ss:$0 sm:$0xff] }
  0x57   : > { %965 = vmatpush3.bf16.msra.mxu1 %v964_v14  ;;  %922 = vmatprep.mubr.msk.f32.mxu0 %vm1110_vm2, %v1109_v3  ;;  %v975_v28 = vadd.f32 %v864_v27, %v862_v26  ;;  %v873_v30 = vld [vmem:[#allocation5 + $0x1] ss:$0 sm:$0xff]  ;;  %v882_v47 = vld [vmem:[#allocation5 + $0x2] ss:$0 sm:$0xff]  ;;  %v876_v48 = vld [vmem:[%s1302_s3 + $0x2] ss:$0 sm:$0xff] }
  0x58   : > { %962 = vmatpush3.bf16.msra.mxu0 %v961_v13  ;;  %966 = vmatprep.subr.bf16.mxu1 %v1111_v11  ;;  %v977_v32 = vadd.f32 %v873_v30, %v867_v29 }
  0x59   : > { %938 = vmatprep.mubr.msk.f32.mxu1 %vm1110_vm2, %v1109_v3  ;;  %941 = vmatprep.subr.mxu0 %v1109_v3 }
  0x5b   : > { %923 = vmatmul.mubr.msk.f32.vlgmr.msra.gmra.mrb[0].mxu0 %vm351_vm3, %v257_v18  ;;  %968 = vmatpush3.bf16.msra.mxu1 %v967_v17 }
  0x5c   : > { %969 = vmatprep.subr.bf16.mxu1 %v1111_v11  ;;  %942 = vmatpush3.msra.mxu0 %v589_v21 }
  0x5d   : > { %943 = vmatprep.mubr.msk.f32.mxu0 %vm1110_vm2, %v1109_v3 }
  0x5e   : > { %939 = vmatmul.mubr.msk.f32.vlgmr.msra.gmra.mrb[0].mxu1 %vm351_vm3, %v257_v18 }
  0x5f   : > { %971 = vmatpush3.bf16.msra.mxu1 %v970_v22  ;;  %954 = vmatprep.mubr.msk.f32.mxu1 %vm1110_vm2, %v1109_v3 }
  0x60   : > { %972 = vmatprep.subr.bf16.mxu1 %v1111_v11  ;;  %944 = vmatmul.mubr.msk.f32.vlgmr.msra.gmra.mrb[2].mxu0 %vm266_vm1, %v256_v2 }
  0x63   : > { %974 = vmatpush3.bf16.msra.mxu1 %v973_v25 }
  0x66   : > { %955 = vmatmul.mubr.msk.f32.vlgmr.msra.gmra.mrb[2].mxu1 %vm351_vm3, %v257_v18 }
 0x12e   : > { %v421_v31 = vpop.f32.mrb[0].mxu0 }
 0x12f   : > { %v976_v33 = vadd.f32 %v975_v28, %v421_v31  ;;  %v924_v34 = vpop.f32.mrb[1].mxu0 }
 0x131   : > { %v884_v35 = vmul.f32 -1.442695, %v976_v33  ;;  %v584_v36 = vpop.f32.mrb[0].mxu1 }
 0x132   : > { %v978_v37 = vadd.f32 %v977_v32, %v584_v36  ;;  %v940_v38 = vpop.f32.mrb[1].mxu1 }
 0x133   : > { %1020 = vpow2.f32 %v884_v35  ;;  %v664_v39 = vpop.f32.mrb[2].mxu0 }
 0x134   : > { %v945_v40 = vpop.f32.mrb[3].mxu0  ;;  %v885_v41 = vmul.f32 -1.442695, %v978_v37  ;;  %v665_v51 = vadd.f32 %v876_v48, %v664_v39 }
 0x136   : > { %1022 = vpow2.f32 %v885_v41 }
 0x139   : > { %v747_v42 = vpop.f32.mrb[2].mxu1 }
 0x13a   : > { %v956_v43 = vpop.f32.mrb[3].mxu1  ;;  %v748_v50 = vadd.f32 %v882_v47, %v747_v42 }
 0x13d   : > { %v1021_v44 = vpop.eup %1020 }
 0x13e   : > { %v755_v45 = vadd.f32 1.0, %v1021_v44 }
 0x140   : > { %1024 = vrcp.f32 %v755_v45  ;;  %v1023_v46 = vpop.eup %1022 }
 0x141   : > { %v762_v49 = vadd.f32 1.0, %v1023_v46 }
 0x143   : > { %1026 = vrcp.f32 %v762_v49 }
 0x14a   : > { %v1025_v52 = vpop.eup %1024 }
 0x14b   : > { %v765_v53 = vmul.f32 %v1025_v52, %v748_v50 }
 0x14d   : > { %v766_v54 = vadd.f32 %v765_v53, %v665_v51  ;;  %v1027_v55 = vpop.eup %1026 }
 0x14e   : > { %v768_v56 = vsub.f32 1.0, %v1027_v55  ;;  %v770_v58 = vmul.f32 %v1027_v55, %v257_v18 }
 0x14f   : > { %1028 = vtanh.f32 %v766_v54 }
 0x159   : > { %v1029_v57 = vpop.eup %1028 }
 0x15a   : > { %v769_v59 = vmul.f32 %v1029_v57, %v768_v56 }
 0x15c   : > { %v771_v60 = vadd.f32 %v770_v58, %v769_v59 }
 0x15e   : > { %773 = vst.msk [vmem:[#allocation2] sm:$0xf] %vm772_vm4, %v771_v60  ;;  %774 = vst.msk [vmem:[%s1234_s10] sm:$0xf] %vm772_vm4, %v771_v60 }
 0x15f PF: > { %s17_s18 = sadd.s32 1, %s1100_s18  }
 0x160   : > { %p14_p10 = scmp.ge.s32.totalorder %s17_s18, 9  }
 0x162   :  { %16 = sbr.rel (!%p14_p10) target bundleno = 2 (0x2), region = 91 }
 0x169   :  { %794 = vsyncpa [#allocation4], 1 }
 0x16a   :  { %796 = vsyncpa [#allocation4 + $0x1], 1 }
 0x16b   :  { %797 = vsyncpa [#allocation6], 1 }

// kernel: gru_forward.4
= control target key start
LH: loop header
LB: loop body
LE: loop exit
PB: predicated region body
PF: predicated region fallthrough
CT: control target
= control target key end

     0   :  { %s1054_s18 = smov 0   ;;  %s1191_s0 = inlined_call_operand.vmem [shape: f32[7,4,32], index: 0, kind: input, shape index: {}]   ;;  %s1192_s1 = inlined_call_operand.vmem [shape: f32[3,32,32], index: 1, kind: input, shape index: {}]   ;;  %s1193_s2 = inlined_call_operand.vmem [shape: f32[3,32,32], index: 2, kind: input, shape index: {}]   ;;  %s1194_s3 = inlined_call_operand.vmem [shape: f32[3,1,32], index: 3, kind: input, shape index: {}]   ;;  %s1195_s4 = inlined_call_operand.vmem [shape: f32[3,1,32], index: 4, kind: input, shape index: {}]   ;;  %s1196_s5 = inlined_call_operand.vmem [shape: f32[7,4,32], index: 5, kind: output, shape index: {}]  }
   0x1 LB: > { %s806_s19 = sadd.s32 4294967295, %s1018_s18   ;;  %p810_p0 = scmp.ge.s32.totalorder %s1018_s18, 1  ;;  %s1018_s18 = sphi %s1054_s18, %s15_s18  }
   0x2   : > { %p186_p1 = scmp.lt.s32.totalorder %s1018_s18, 8 }
   0x4   : > { %p187_p2 = pnand %p810_p0, %p186_p1 }
   0x5   : > { %p212_p3 = scmp.lt.s32.totalorder (!%p187_p2), %s806_s19, 6  ;;  %p813_p4 = scmp.ne.s32.totalorder (!%p187_p2), %s806_s19, 0 }
   0x6   : > { %190 = sbr.rel (%p187_p2) target bundleno = 299 (0x12b), region = 40 }
   0xd   : > { %s213_s20 = scalar_select %p212_p3, %s806_s19, 6 }
   0xe   : > { %223 = sbr.rel (%p813_p4) target bundleno = 21 (0x15), region = 44  ;;  %vm224_vm0 = vcmask (!%p813_p4), 257024   ;;  %v1020_v0 = vmov (!%p813_p4), 0.0  }
   0xf   : > { %s811_s21 = sshll.u32 %s213_s20, 2  ;;  %225 = vst.msk [vmem:[#allocation2] sm:$0xf] (!%p813_p4), %vm224_vm0, %v1020_v0 }
  0x10   : > { %s1065_s24 = scalar_lea.vmem %s1191_s0, %s811_s21  ;;  %s1070_s27 = scalar_lea.vmem %s1196_s5, %s811_s21 }
  0x15 PF: > { %v228_v1 = vld [vmem:[%s1192_s1] sm:$0xff]  ;;  %v229_v2 = vld [vmem:[%s1192_s1 + $0x8] sm:$0xff]  ;;  %v230_v3 = vld [vmem:[%s1192_s1 + $0x10] sm:$0xff]  ;;  %v1021_v4 = vmov 0.0|0.0   ;;  %vm1022_vm1 = vmmov 0   ;;  %v1023_v10 = vmov 0.0  }
  0x16   : > { %946 = vmatprep.subr.bf16.mxu0 %v1021_v4  ;;  %v947_v5 = vpack.c.bf16 %v229_v2, %v228_v1  ;;  %v231_v6 = vld [vmem:[%s1192_s1 + $0x18] sm:$0xff]  ;;  %958 = vmatprep.subr.bf16.mxu1 %v1021_v4  ;;  %v818_v7 = vld [vmem:[%s1192_s1 + $0x20] sm:$0xff]  ;;  %v819_v8 = vld [vmem:[%s1192_s1 + $0x28] sm:$0xff]  ;;  %vm239_vm2 = vcmask 261120   ;;  %vm750_vm3 = vcmask 257024  }
  0x17   : > { %v959_v9 = vpack.c.bf16 %v819_v8, %v818_v7  ;;  %888 = vmatprep.mubr.msk.f32.mxu0 %vm1022_vm1, %v1023_v10  ;;  %910 = vmatprep.mubr.msk.f32.mxu1 %vm1022_vm1, %v1023_v10  ;;  %v950_v11 = vpack.c.bf16 %v231_v6, %v230_v3  ;;  %v820_v12 = vld [vmem:[%s1192_s1 + $0x30] sm:$0xff]  ;;  %v821_v13 = vld [vmem:[%s1192_s1 + $0x38] sm:$0xff]  ;;  %v313_v14 = vld [vmem:[%s1193_s2] sm:$0xff] }
  0x18   : > { %948 = vmatpush3.bf16.msra.mxu0 %v947_v5  ;;  %v314_v15 = vld [vmem:[%s1193_s2 + $0x8] sm:$0xff]  ;;  %v962_v16 = vpack.c.bf16 %v821_v13, %v820_v12  ;;  %v825_v17 = vld [vmem:[%s1193_s2 + $0x20] sm:$0xff]  ;;  %v315_v21 = vld [vmem:[%s1193_s2 + $0x10] sm:$0xff] }
  0x19   : > { %949 = vmatprep.subr.bf16.mxu0 %v1021_v4  ;;  %960 = vmatpush3.bf16.msra.mxu1 %v959_v9  ;;  %v826_v18 = vld [vmem:[%s1193_s2 + $0x28] sm:$0xff]  ;;  %v226_v19 = vld [vmem:[%s1065_s24] sm:$0xf]  ;;  %v953_v20 = vpack.c.bf16 %v314_v15, %v313_v14  ;;  %v316_v22 = vld [vmem:[%s1193_s2 + $0x18] sm:$0xff] }
  0x1a   : > { %961 = vmatprep.subr.bf16.mxu1 %v1021_v4  ;;  %v965_v23 = vpack.c.bf16 %v826_v18, %v825_v17  ;;  %v827_v24 = vld [vmem:[%s1193_s2 + $0x30] sm:$0xff]  ;;  %v828_v25 = vld [vmem:[%s1193_s2 + $0x38] sm:$0xff]  ;;  %v956_v26 = vpack.c.bf16 %v316_v22, %v315_v21  ;;  %v832_v28 = vld [vmem:[%s1192_s1 + $0x40] sm:$0xff] }
  0x1b   : > { %v968_v27 = vpack.c.bf16 %v828_v25, %v827_v24  ;;  %v833_v29 = vld [vmem:[%s1192_s1 + $0x48] sm:$0xff]  ;;  %v839_v30 = vld [vmem:[%s1193_s2 + $0x40] sm:$0xff]  ;;  %v834_v35 = vld [vmem:[%s1192_s1 + $0x50] sm:$0xff] }
  0x1c   : > { %951 = vmatpush3.bf16.msra.mxu0 %v950_v11  ;;  %v840_v31 = vld [vmem:[%s1193_s2 + $0x48] sm:$0xff]  ;;  %v227_v32 = vld [vmem:[#allocation2] sm:$0xf]  ;;  %v971_v33 = vpack.c.bf16 %v833_v29, %v832_v28  ;;  %v835_v36 = vld [vmem:[%s1192_s1 + $0x58] sm:$0xff] }
  0x1d   : > { %952 = vmatprep.subr.bf16.mxu0 %v1021_v4  ;;  %963 = vmatpush3.bf16.msra.mxu1 %v962_v16  ;;  %v977_v34 = vpack.c.bf16 %v840_v31, %v839_v30  ;;  %v841_v37 = vld [vmem:[%s1193_s2 + $0x50] sm:$0xff]  ;;  %v842_v38 = vld [vmem:[%s1193_s2 + $0x58] sm:$0xff]  ;;  %v974_v39 = vpack.c.bf16 %v835_v36, %v834_v35  ;;  %v814_v41 = vld [vmem:[%s1194_s3] ss:$0 sm:$0xff] }
  0x1e   : > { %964 = vmatprep.subr.bf16.mxu1 %v1021_v4  ;;  %v980_v40 = vpack.c.bf16 %v842_v38, %v841_v37  ;;  %v816_v42 = vld [vmem:[%s1195_s4] ss:$0 sm:$0xff]  ;;  %v823_v44 = vld [vmem:[%s1194_s3 + $0x1] ss:$0 sm:$0xff]  ;;  %v844_v62 = vld [vmem:[%s1195_s4 + $0x2] ss:$0 sm:$0xff] }
  0x1f   : > { %889 = vmatmul.mubr.msk.f32.vlgmr.msra.gmra.mrb[0].mxu0 %vm239_vm2, %v226_v19  ;;  %v982_v43 = vadd.f32 %v816_v42, %v814_v41  ;;  %v830_v45 = vld [vmem:[%s1195_s4 + $0x1] ss:$0 sm:$0xff]  ;;  %v837_v63 = vld [vmem:[%s1194_s3 + $0x2] ss:$0 sm:$0xff] }
  0x20   : > { %954 = vmatpush3.bf16.msra.mxu0 %v953_v20  ;;  %911 = vmatmul.mubr.msk.f32.vlgmr.msra.gmra.mrb[0].mxu1 %vm239_vm2, %v226_v19  ;;  %v984_v47 = vadd.f32 %v830_v45, %v823_v44 }
  0x21   : > { %955 = vmatprep.subr.bf16.mxu0 %v1021_v4  ;;  %966 = vmatpush3.bf16.msra.mxu1 %v965_v23 }
  0x22   : > { %899 = vmatprep.mubr.msk.f32.mxu0 %vm1022_vm1, %v1023_v10  ;;  %967 = vmatprep.subr.bf16.mxu1 %v1021_v4 }
  0x23   : > { %921 = vmatprep.mubr.msk.f32.mxu1 %vm1022_vm1, %v1023_v10 }
  0x24   : > { %957 = vmatpush3.bf16.msra.mxu0 %v956_v26 }
  0x25   : > { %969 = vmatpush3.bf16.msra.mxu1 %v968_v27  ;;  %970 = vmatprep.subr.bf16.mxu0 %v1021_v4 }
  0x26   : > { %976 = vmatprep.subr.bf16.mxu1 %v1021_v4 }
  0x27   : > { %900 = vmatmul.mubr.msk.f32.vlgmr.msra.gmra.mrb[0].mxu0 %vm239_vm2, %v227_v32 }
  0x28   : > { %922 = vmatmul.mubr.msk.f32.vlgmr.msra.gmra.mrb[0].mxu1 %vm239_vm2, %v227_v32  ;;  %972 = vmatpush3.bf16.msra.mxu0 %v971_v33 }
  0x29   : > { %978 = vmatpush3.bf16.msra.mxu1 %v977_v34  ;;  %973 = vmatprep.subr.bf16.mxu0 %v1021_v4 }
  0x2a   : > { %979 = vmatprep.subr.bf16.mxu1 %v1021_v4  ;;  %943 = vmatprep.mubr.msk.f32.mxu1 %vm1022_vm1, %v1023_v10 }
  0x2b   : > { %932 = vmatprep.mubr.msk.f32.mxu0 %vm1022_vm1, %v1023_v10 }
  0x2c   : > { %975 = vmatpush3.bf16.msra.mxu0 %v974_v39 }
  0x2d   : > { %981 = vmatpush3.bf16.msra.mxu1 %v980_v40 }
  0x2f   : > { %933 = vmatmul.mubr.msk.f32.vlgmr.msra.gmra.mrb[2].mxu0 %vm239_vm2, %v226_v19 }
  0x30   : > { %944 = vmatmul.mubr.msk.f32.vlgmr.msra.gmra.mrb[2].mxu1 %vm239_vm2, %v227_v32 }
  0xfa   : > { %v393_v46 = vpop.f32.mrb[0].mxu0 }
  0xfb   : > { %v983_v48 = vadd.f32 %v982_v43, %v393_v46  ;;  %v901_v49 = vpop.f32.mrb[1].mxu0  ;;  %v559_v50 = vpop.f32.mrb[0].mxu1 }
  0xfc   : > { %v923_v51 = vpop.f32.mrb[1].mxu1  ;;  %v985_v53 = vadd.f32 %v984_v47, %v559_v50 }
  0xfd   : > { %v846_v52 = vmul.f32 -1.442695, %v983_v48 }
  0xfe   : > { %v847_v54 = vmul.f32 -1.442695, %v985_v53 }
  0xff   : > { %1002 = vpow2.f32 %v846_v52 }
 0x100   : > { %1004 = vpow2.f32 %v847_v54 }
 0x102   : > { %v642_v55 = vpop.f32.mrb[2].mxu0 }
 0x103   : > { %v725_v56 = vpop.f32.mrb[2].mxu1  ;;  %v934_v57 = vpop.f32.mrb[3].mxu0  ;;  %v643_v2 = vadd.f32 %v837_v63, %v642_v55 }
 0x104   : > { %v945_v58 = vpop.f32.mrb[3].mxu1  ;;  %v726_v1 = vadd.f32 %v844_v62, %v725_v56 }
 0x109   : > { %v1003_v59 = vpop.eup %1002 }
 0x10a   : > { %v733_v60 = vadd.f32 1.0, %v1003_v59  ;;  %v1005_v61 = vpop.eup %1004 }
 0x10b   : > { %v740_v0 = vadd.f32 1.0, %v1005_v61 }
 0x10c   : > { %1006 = vrcp.f32 %v733_v60 }
 0x10d   : > { %1008 = vrcp.f32 %v740_v0 }
 0x116   : > { %v1007_v3 = vpop.eup %1006 }
 0x117   : > { %v743_v4 = vmul.f32 %v1007_v3, %v726_v1  ;;  %v1009_v6 = vpop.eup %1008 }
 0x118   : > { %v746_v7 = vsub.f32 1.0, %v1009_v6  ;;  %v748_v9 = vmul.f32 %v1009_v6, %v227_v32 }
 0x119   : > { %v744_v5 = vadd.f32 %v743_v4, %v643_v2 }
 0x11b   : > { %1010 = vtanh.f32 %v744_v5 }
 0x125   : > { %v1011_v8 = vpop.eup %1010 }
 0x126   : > { %v747_v10 = vmul.f32 %v1011_v8, %v746_v7 }
 0x128   : > { %v749_v11 = vadd.f32 %v748_v9, %v747_v10 }
 0x12a   : > { %751 = vst.msk [vmem:[#allocation2] sm:$0xf] %vm750_vm3, %v749_v11  ;;  %752 = vst.msk [vmem:[%s1070_s27] sm:$0xf] %vm750_vm3, %v749_v11 }
 0x12b PF: > { %s15_s18 = sadd.s32 1, %s1018_s18  }
 0x12c   : > { %p12_p5 = scmp.ge.s32.totalorder %s15_s18, 9  }
 0x12e   :  { %14 = sbr.rel (!%p12_p5) target bundleno = 1 (0x1), region = 82 }

// kernel: gru_forward.5
= control target key start
LH: loop header
LB: loop body
LE: loop exit
PB: predicated region body
PF: predicated region fallthrough
CT: control target
= control target key end

     0   :  { %17 = vsyncpa [#allocation3], 0  ;;  %vm59_vm0 = vcmask 1041408   ;;  %v744_v3 = vmov 0.0|0.0   ;;  %vm745_vm1 = vmmov 1   ;;  %vm746_vm3 = vmmov 0   ;;  %s919_s0 = inlined_call_operand.vmem [shape: f32[4,10], index: 0, kind: input, shape index: {}]   ;;  %s920_s1 = inlined_call_operand.vmem [shape: f32[4,32], index: 1, kind: input, shape index: {}]   ;;  %s921_s2 = inlined_call_operand.vmem [shape: f32[10,32], index: 2, kind: input, shape index: {}]   ;;  %s922_s3 = inlined_call_operand.vmem [shape: f32[1,32], index: 3, kind: input, shape index: {}]   ;;  %s923_s4 = inlined_call_operand.vmem [shape: f32[32,32], index: 4, kind: input, shape index: {}]   ;;  %s924_s5 = inlined_call_operand.vmem [shape: f32[1,32], index: 5, kind: input, shape index: {}]   ;;  %s925_s6 = inlined_call_operand.vmem [shape: f32[32,24], index: 6, kind: input, shape index: {}]   ;;  %s926_s7 = inlined_call_operand.vmem [shape: f32[1,24], index: 7, kind: input, shape index: {}]   ;;  %s927_s8 = inlined_call_operand.vmem [shape: f32[24,4], index: 8, kind: input, shape index: {}]   ;;  %s928_s9 = inlined_call_operand.vmem [shape: f32[1,4], index: 9, kind: input, shape index: {}]   ;;  %s929_s10 = inlined_call_operand.hbm [shape: f32[4,4], index: 10, kind: output, shape index: {0}]   ;;  %s930_s11 = inlined_call_operand.hbm [shape: f32[4,4], index: 11, kind: output, shape index: {1}]  }
   0x1   :  { %v44_v0 = vld [vmem:[%s923_s4] sm:$0xff]  ;;  %v45_v1 = vld [vmem:[%s923_s4 + $0x8] sm:$0xff]  ;;  %660 = vmatprep.subr.bf16.mxu1 %v744_v3  ;;  %656 = vmatprep.subr.bf16.mxu0 %v744_v3  ;;  %vm658_vm2 = vmpackc.low %vm59_vm0, %vm745_vm1  ;;  %v747_v7 = vmov 0.0  }
   0x2   :  { %v41_v2 = vld [vmem:[%s921_s2] sm:$0xff]  ;;  %v661_v4 = vpack.c.bf16 %v45_v1, %v44_v0  ;;  %v42_v5 = vld [vmem:[%s921_s2 + $0x8] sm:$0x3]  ;;  %602 = vmatprep.mubr.msk.f32.mxu0 %vm746_vm3, %v747_v7  ;;  %v46_v8 = vld [vmem:[%s923_s4 + $0x10] sm:$0xff]  ;;  %613 = vmatprep.mubr.msk.f32.mxu1 %vm746_vm3, %v747_v7 }
   0x3   :  { %v657_v6 = vpack.c.bf16 %v42_v5, %v41_v2  ;;  %v47_v9 = vld [vmem:[%s923_s4 + $0x18] sm:$0xff] }
   0x4   :  { %662 = vmatpush3.bf16.msra.mxu1 %v661_v4  ;;  %v664_v10 = vpack.c.bf16 %v47_v9, %v46_v8 }
   0x5   :  { %18 = vsyncpa [#allocation5], 0  ;;  %659 = vmatpush3.bf16.msk.msra.mxu0 %vm658_vm2, %v657_v6  ;;  %663 = vmatprep.subr.bf16.mxu1 %v744_v3  ;;  %v39_v11 = vld [vmem:[%s919_s0] sm:$0xf]  ;;  %vm55_vm4 = vcmask 80896   ;;  %vm133_vm5 = vcmask 261120  }
   0x6   :  { %666 = vmatprep.subr.bf16.mxu0 %v744_v3  ;;  %v40_v12 = vld [vmem:[%s920_s1] sm:$0xf]  ;;  %v217_v14 = vld [vmem:[%s925_s6 + $0x8] sm:$0xff]  ;;  %v218_v16 = vld [vmem:[%s925_s6 + $0x10] sm:$0xff]  ;;  %vm308_vm6 = vcmask 195584   ;;  %s748_s27 = smov [#allocation2]  }
   0x7   :  { %v216_v13 = vld [vmem:[%s925_s6] sm:$0xff]  ;;  %v219_v17 = vld [vmem:[%s925_s6 + $0x18] sm:$0xff]  ;;  %v299_v34 = vld [vmem:[%s927_s8 + $0x8] sm:$0xff]  ;;  %s539_s28 = sshll.u32 %s748_s27, 4  ;;  %vm529_vm7 = vcmask 27648   ;;  %s749_s2 = smov [#allocation4]   ;;  %s540_s28 = int_to_ptr.vmem [resolvable:$true] %s539_s28 }
   0x8   :  { %603 = vmatmul.mubr.msk.f32.vlgmr.msra.gmra.mrb[0].mxu0 %vm55_vm4, %v39_v11  ;;  %665 = vmatpush3.bf16.msra.mxu1 %v664_v10  ;;  %v667_v15 = vpack.c.bf16 %v217_v14, %v216_v13  ;;  %v670_v18 = vpack.c.bf16 %v219_v17, %v218_v16  ;;  %v561_v19 = vld [vmem:[%s922_s3] ss:$0 sm:$0xff]  ;;  %v300_v36 = vld [vmem:[%s927_s8 + $0x10] sm:$0xff]  ;;  %s549_s29 = sshll.u32 %s749_s2, 4  ;;  %s696_s30 = scalar_lea.vmem %s540_s28, 64  ;;  %s550_s29 = int_to_ptr.vmem [resolvable:$true] %s549_s29 }
   0x9   :  { %624 = vmatprep.mubr.msk.f32.mxu0 %vm746_vm3, %v747_v7  ;;  %672 = vmatprep.subr.bf16.mxu1 %v744_v3  ;;  %v565_v23 = vld [vmem:[%s924_s5] ss:$0 sm:$0xff]  ;;  %p697_p0 = scmp.ne.s32.totalorder %s540_s28, %s696_s30  ;;  %p701_p1 = scmp.lt.s32.totalorder %s540_s28, %s540_s28 }
   0xa   :  { %668 = vmatpush3.bf16.msra.mxu0 %v667_v15  ;;  %v566_v29 = vld [vmem:[%s926_s7] ss:$0 sm:$0xff]  ;;  %p702_p2 = scmp.lt.s32.totalorder %s696_s30, %s696_s30 }
   0xb   :  { %614 = vmatmul.mubr.msk.f32.vlgmr.msra.gmra.mrb[0].mxu1 %vm133_vm5, %v40_v12  ;;  %669 = vmatprep.subr.bf16.mxu0 %v744_v3  ;;  %v298_v33 = vld [vmem:[%s927_s8] sm:$0xff] }
   0xc   :  { %633 = vmatprep.mubr.msk.f32.mxu1 %vm746_vm3, %v747_v7  ;;  %v673_v35 = vpack.c.bf16 %v299_v34, %v298_v33  ;;  %v568_v44 = vld [vmem:[%s928_s9] ss:$0 sm:$0xff]  ;;  %p703_p3 = por %p702_p2, %p701_p1 }
   0xe   :  { %671 = vmatpush3.bf16.msra.mxu0 %v670_v18  ;;  %674 = vmatpush3.bf16.msra.mxu1 %v673_v35  ;;  %p704_p4 = pnand %p703_p3, %p697_p0 }
   0xf   :  { %675 = vmatprep.subr.bf16.mxu0 %v744_v3  ;;  %631 = vmatprep.subr.mxu1 %v747_v7 }
  0x11   :  { %625 = vmatmul.mubr.msk.f32.vlgmr.msra.gmra.mrb[2].mxu0 %vm133_vm5, %v40_v12 }
  0x12   :  { %677 = vmatpush3.bf16.msra.mxu0 %v667_v15  ;;  %644 = vmatprep.mubr.msk.f32.mxu0 %vm746_vm3, %v747_v7 }
  0x13   :  { %678 = vmatprep.subr.bf16.mxu0 %v744_v3  ;;  %632 = vmatpush3.msra.mxu1 %v300_v36 }
  0x14   :  { %681 = vmatprep.subr.bf16.mxu1 %v744_v3 }
  0x16   :  { %680 = vmatpush3.bf16.msra.mxu0 %v670_v18 }
  0xdb   :  { %v129_v20 = vpop.f32.mrb[0].mxu0 }
  0xdc   :  { %v130_v21 = vadd.f32 %v561_v19, %v129_v20  ;;  %v604_v22 = vpop.f32.mrb[1].mxu0 }
  0xde   :  { %v203_v24 = vpop.f32.mrb[0].mxu1 }
  0xdf   :  { %v207_v25 = vadd.f32 %v203_v24, %v130_v21  ;;  %v615_v26 = vpop.f32.mrb[1].mxu1 }
  0xe1   :  { %v214_v27 = vadd.f32 %v565_v23, %v207_v25 }
  0xe3   :  { %690 = vtanh.f32 %v214_v27 }
  0xe4   :  { %v293_v30 = vpop.f32.mrb[2].mxu0 }
  0xe5   :  { %v294_v31 = vadd.f32 %v566_v29, %v293_v30  ;;  %v626_v32 = vpop.f32.mrb[3].mxu0 }
  0xe7   :  { %692 = vtanh.f32 %v294_v31 }
  0xed   :  { %v691_v28 = vpop.eup %690 }
  0xee   :  { %645 = vmatmul.mubr.msk.f32.vlgmr.msra.gmra.mrb[4].mxu0 %vm133_vm5, %v691_v28 }
  0xf1   :  { %v693_v37 = vpop.eup %692 }
  0xf2   :  { %634 = vmatmul.mubr.msk.f32.vlgmr.msra.gmra.mrb[2].mxu1 %vm308_vm6, %v693_v37 }
  0xf3   :  { %683 = vmatpush3.bf16.msra.mxu1 %v673_v35  ;;  %653 = vmatprep.mubr.msk.f32.mxu1 %vm746_vm3, %v747_v7 }
  0xf4   :  { %651 = vmatprep.subr.mxu1 %v747_v7 }
  0xf7   :  { %652 = vmatpush3.msra.mxu1 %v300_v36 }
 0x1c1   :  { %v451_v38 = vpop.f32.mrb[4].mxu0 }
 0x1c2   :  { %v452_v39 = vadd.f32 %v566_v29, %v451_v38  ;;  %v646_v40 = vpop.f32.mrb[5].mxu0 }
 0x1c4   :  { %694 = vtanh.f32 %v452_v39 }
 0x1c5   :  { %v378_v42 = vpop.f32.mrb[2].mxu1 }
 0x1c6   :  { %v635_v43 = vpop.f32.mrb[3].mxu1  ;;  %v379_v46 = vadd.f32 %v568_v44, %v378_v42 }
 0x1ce   :  { %v695_v41 = vpop.eup %694 }
 0x1cf   :  { %654 = vmatmul.mubr.msk.f32.vlgmr.msra.gmra.mrb[4].mxu1 %vm308_vm6, %v695_v41 }
 0x2a2   :  { %v525_v45 = vpop.f32.mrb[4].mxu1 }
 0x2a3   :  { %v526_v47 = vadd.f32 %v568_v44, %v525_v45  ;;  %v655_v48 = vpop.f32.mrb[5].mxu1 }
 0x2a5   :  { %v531_v49 = vsub.f32 %v526_v47, %v379_v46  ;;  %530 = vst.msk [vmem:[#allocation2] sm:$0xf] %vm529_vm7, %v526_v47 }
 0x2a6   :  { %707 = shalt.err (!%p704_p4)
}
 0x2a7   :  { %s708_s0 = scalar_lea.hbm %s929_s10, 64 }
 0x2a8   :  { %p709_p5 = scmp.ne.s32.totalorder %s929_s10, %s708_s0  ;;  %p712_p6 = scmp.lt.u32.totalorder %s708_s0, %s929_s10 }
 0x2aa   :  { %p714_p7 = pnand %p712_p6, %p709_p5 }
 0x2ac   :  { %717 = shalt.err (!%p714_p7)
}
 0x2ad   :  { %542 = dma.vmem_to_hbm [thread:$0]  %s540_s28, 64, %s929_s10, [#allocation3]   ;;  %532 = vst.msk [vmem:[#allocation4] sm:$0xf] %vm529_vm7, %v531_v49 }
 0x2ae   :  { %s718_s17 = scalar_lea.vmem %s550_s29, 64  ;;  %p723_p9 = scmp.lt.s32.totalorder %s550_s29, %s550_s29 }
 0x2af   :  { %p719_p8 = scmp.ne.s32.totalorder %s550_s29, %s718_s17  ;;  %p724_p10 = scmp.lt.s32.totalorder %s718_s17, %s718_s17 }
 0x2b1   :  { %p725_p11 = por %p724_p10, %p723_p9 }
 0x2b3   :  { %p726_p12 = pnand %p725_p11, %p719_p8 }
 0x2b5   :  { %729 = shalt.err (!%p726_p12)
}
 0x2b6   :  { %s730_s6 = scalar_lea.hbm %s930_s11, 64 }
 0x2b7   :  { %p731_p13 = scmp.ne.s32.totalorder %s930_s11, %s730_s6  ;;  %p734_p0 = scmp.lt.u32.totalorder %s730_s6, %s930_s11 }
 0x2b9   :  { %p736_p1 = pnand %p734_p0, %p731_p13 }
 0x2bb   :  { %739 = shalt.err (!%p736_p1)
}
 0x2bc   :  { %552 = dma.vmem_to_hbm [thread:$0]  %s550_s29, 64, %s930_s11, [#allocation5]  }
 0x2bd   :  { %740 = dma.done.wait [#allocation3], 64  }
 0x2be   :  { %741 = vsyncadd [#allocation3], 4294967232 }
 0x2bf   :  { %742 = dma.done.wait [#allocation5], 64  }
 0x2c0   :  { %743 = vsyncadd [#allocation5], 4294967232 }
 0x2c1   :  { %559 = vsyncpa [#allocation3], 1 }
 0x2c2   :  { %560 = vsyncpa [#allocation5], 1 }

</bundles_post_ra>
